<compile_context>
chip_gen: v5e
topology: v5e:2x2
jax: 0.10.0
libtpu: 0.0.40
codegen_flags: <defaults>
</compile_context>

<pallas_src>
import math

import jax
import jax.numpy as jnp
from jax.experimental import pallas as pl
from jax.experimental.pallas import tpu as pltpu


def _round_up(x: int, m: int) -> int:
    return ((x + m - 1) // m) * m


def _vmem_budget_bytes() -> int:
    """Per-core VMEM budget (with ~15% headroom), derived per TPU generation."""
    cap = 64 << 20  # conservative fallback == v7x per-TC physical VMEM
    try:
        info = pltpu.get_tpu_info()
        cap = int(getattr(info, "vmem_capacity_bytes", cap))
    except Exception:
        pass
    return max(int(cap * 0.85), 16 << 20)


# ---------------------------------------------------------------------------
# Path 1: one-hot MXU gather (small vocabularies), vocab-blocked accumulation.
# ---------------------------------------------------------------------------
def _onehot_kernel(idx_ref, table_ref, out_ref, acc_ref):
    """Grid step (i, v): accumulate the contribution of vocab slab v for token tile i.

    idx_ref   : (rows, k) int32      -- k tokens packed per output row
    table_ref : (Vblk, D)            -- one vocab slab of the (padded) table
    out_ref   : (rows, k*D)          -- lane-dense output tile (written once, at last v)
    acc_ref   : (rows, k*D) f32      -- VMEM accumulator, resident across the v axis
    """
    v = pl.program_id(1)

    @pl.when(v == 0)
    def _init():
        acc_ref[...] = jnp.zeros_like(acc_ref)

    idx = idx_ref[...]                                   # (rows, k) int32
    tbl = table_ref[...]                                 # (Vblk, D)
    rows, k = idx.shape
    vblk, d = tbl.shape

    # Column ids covered by this vocab slab.
    col = v * vblk + jax.lax.broadcasted_iota(jnp.int32, (rows, vblk), 1)

    # One-hot gather on the MXU, built in the table dtype (bf16 table -> bf16
    # one-hot -> full-rate MXU; f32 table keeps the exact f32 MXU path).
    for j in range(k):                                   # k <= 4, unrolled at trace time
        onehot = (col == idx[:, j:j + 1]).astype(tbl.dtype)              # (rows, Vblk)
        acc_ref[:, j * d:(j + 1) * d] += jnp.dot(
            onehot, tbl, preferred_element_type=jnp.float32)             # (rows, D)

    @pl.when(v == pl.num_programs(1) - 1)
    def _store():
        # Single dense full-width store per tile (lane-dense writeback).
        out_ref[...] = acc_ref[...].astype(out_ref.dtype)


def _onehot_lookup(table: jax.Array, idx: jax.Array, *, tok_target: int,
                   vocab_block: int) -> jax.Array:
    V, D = table.shape
    N = idx.shape[0]
    itemsize = jnp.dtype(table.dtype).itemsize

    # Lane-packing factor: pack k tokens per output row so the output block's
    # last dim is a multiple of 128 (dense vector stores + dense writeback).
    if D % 128 == 0:
        k = 1
    elif 128 % D == 0:
        k = 128 // D
    else:
        k = 1                      # non-aligned D: fall back to (rows, D) blocks

    align = 8 * k                  # keeps rows_blk = tok // k a multiple of 8
    if N >= tok_target:
        tok = _round_up(tok_target, align)
    else:
        tok = _round_up(max(N, 1), align)
    # v7x has 2 TensorCores: when everything fits in one tile but there is
    # enough work, split into 2 tiles so the "parallel" axis feeds both cores.
    if _round_up(N, tok) // tok == 1 and N >= 2 * align:
        tok = _round_up(-(-N // 2), align)
    n_pad = _round_up(N, tok)
    n_tok_tiles = n_pad // tok

    # Vocab blocking: only a (Vblk, D) slab is VMEM-resident per step.
    vp_blk = min(vocab_block, _round_up(max(V, 1), 128))
    vp = _round_up(max(V, 1), vp_blk)
    n_vblk = vp // vp_blk

    rows_blk = tok // k
    out_cols = k * D
    n_rows = n_pad // k

    idx_p = jnp.pad(idx, (0, n_pad - N))                 # pad ids -> 0 (rows discarded)
    idx2d = idx_p.reshape(n_rows, k)
    table_p = table if vp == V else jnp.pad(table, ((0, vp - V), (0, 0)))

    # VMEM accounting (per core): double-buffered blocks + f32 accumulator +
    # one-hot / iota intermediates + partial matmul results + headroom.
    vmem_need = (
        2 * rows_blk * k * 4                       # idx tiles
        + 2 * vp_blk * D * itemsize                # table slabs
        + 2 * rows_blk * out_cols * itemsize       # output tiles
        + rows_blk * out_cols * 4                  # f32 accumulator scratch
        + rows_blk * vp_blk * (4 + itemsize)       # iota + one-hot temporaries
        + rows_blk * D * 4 * k                     # partial dot results
        + (4 << 20)
    )
    budget = _vmem_budget_bytes()                  # per-generation cap (not a 64 MiB clamp)
    vmem_limit = int(min(max(vmem_need, 32 << 20), budget))

    cost = pl.CostEstimate(
        flops=int(2 * n_pad * vp * D),
        transcendentals=0,
        bytes_accessed=int(n_pad * 4 + n_tok_tiles * vp * D * itemsize
                           + n_pad * D * itemsize),
    )

    out_packed = pl.pallas_call(
        _onehot_kernel,
        out_shape=jax.ShapeDtypeStruct((n_rows, out_cols), table.dtype),
        grid_spec=pltpu.PrefetchScalarGridSpec(
            num_scalar_prefetch=0,
            grid=(n_tok_tiles, n_vblk),
            in_specs=[
                pl.BlockSpec((rows_blk, k), lambda i, v: (i, 0)),   # token-id tile
                pl.BlockSpec((vp_blk, D), lambda i, v: (v, 0)),     # vocab slab
            ],
            out_specs=pl.BlockSpec((rows_blk, out_cols), lambda i, v: (i, 0)),
            scratch_shapes=[pltpu.VMEM((rows_blk, out_cols), jnp.float32)],
        ),
        compiler_params=pltpu.CompilerParams(
            dimension_semantics=("parallel", "arbitrary"),
            vmem_limit_bytes=vmem_limit,
        ),
        cost_estimate=cost,
    )(idx2d, table_p)

    # (n_rows, k*D) is the same row-major buffer as (n_pad, D): free views.
    return out_packed.reshape(n_pad, D)[:N]


# ---------------------------------------------------------------------------
# Path 2: DMA row-gather (large vocabularies) -- table stays in HBM.
# ---------------------------------------------------------------------------
_GATHER_TILE = 1024      # tokens per grid step
_GATHER_BUFS = 8         # in-flight row DMAs


def _gather_kernel(ids_ref, table_hbm, out_ref, sems):
    """Grid step i: gather `tok` rows of the HBM table into the output tile.

    ids_ref   : (n_pad,) int32 in SMEM (scalar prefetch)
    table_hbm : (V, D) ref in HBM (memory_space=pl.ANY)
    out_ref   : (tok, D) VMEM output tile
    sems      : DMA semaphores, shape (_GATHER_BUFS,)
    """
    tok, _ = out_ref.shape
    nbuf = _GATHER_BUFS
    base = pl.program_id(0) * tok

    def row_copy(src_row, dst_row, slot):
        return pltpu.make_async_copy(
            table_hbm.at[pl.ds(src_row, 1), :],
            out_ref.at[pl.ds(dst_row, 1), :],
            sems.at[slot],
        )

    def start(t, slot):
        row_copy(ids_ref[base + t], t, slot).start()

    def wait(t, slot):
        # Only the transfer size matters for the wait; use a constant src row.
        row_copy(0, t, slot).wait()

    # Prime up to nbuf in-flight row DMAs (static unroll, nbuf is small).
    for t in range(min(nbuf, tok)):
        start(t, t % nbuf)

    @pl.loop(0, tok)
    def _(t):
        slot = t % nbuf
        wait(t, slot)

        @pl.when(t + nbuf < tok)
        def _():
            start(t + nbuf, slot)


def _gather_lookup(table: jax.Array, idx: jax.Array) -> jax.Array:
    V, D = table.shape
    N = idx.shape[0]
    itemsize = jnp.dtype(table.dtype).itemsize

    tok = _round_up(min(_GATHER_TILE, _round_up(max(N, 1), 8)), 8)
    n_pad = _round_up(N, tok)

    # Clip ids so padded / out-of-range ids can never DMA out of bounds.
    idx_p = jnp.clip(jnp.pad(idx, (0, n_pad - N)), 0, V - 1)

    cost = pl.CostEstimate(
        flops=0,
        transcendentals=0,
        bytes_accessed=int(n_pad * 4 + 2 * n_pad * D * itemsize),
    )

    out = pl.pallas_call(
        _gather_kernel,
        out_shape=jax.ShapeDtypeStruct((n_pad, D), table.dtype),
        grid_spec=pltpu.PrefetchScalarGridSpec(
            num_scalar_prefetch=1,                       # flattened ids -> SMEM
            grid=(n_pad // tok,),
            in_specs=[pl.BlockSpec(memory_space=pl.ANY)],  # table stays in HBM
            out_specs=pl.BlockSpec((tok, D), lambda i, ids: (i, 0)),
            scratch_shapes=[pltpu.SemaphoreType.DMA((_GATHER_BUFS,))],
        ),
        compiler_params=pltpu.CompilerParams(
            dimension_semantics=("arbitrary",),
        ),
        cost_estimate=cost,
    )(idx_p, table)
    return out[:N]


# ---------------------------------------------------------------------------
# Public wrapper: nn.Embedding forward.
# ---------------------------------------------------------------------------
def embedding_lookup(table: jax.Array, x: jax.Array, *, method: str | None = None,
                     tok_target: int = 4096, onehot_max_vocab: int = 2048,
                     vocab_block: int = 512) -> jax.Array:
    """nn.Embedding forward: gather rows of `table` ([V, D]) at int indices `x`."""
    V, D = table.shape
    lead = x.shape
    N = int(math.prod(lead)) if lead else 1
    idx_flat = x.reshape((N,)).astype(jnp.int32)

    if method is None:
        # One-hot MXU gather costs O(Vp) per token; only worth it for small vocabs.
        method = "onehot" if _round_up(max(V, 1), 128) <= onehot_max_vocab else "gather"

    if method == "onehot":
        out_flat = _onehot_lookup(table, idx_flat, tok_target=tok_target,
                                  vocab_block=vocab_block)
    else:
        out_flat = _gather_lookup(table, idx_flat)

    return out_flat.reshape(lead + (D,))


if __name__ == "__main__":
    root = jax.random.PRNGKey(0)
    keys = jax.random.split(root, 6)

    # --- Test 1: tiny config consistent with the module ------------------
    # vocab = {PAD, UNK, SEP, EOS} + 12 words, embedding_size = 32, [B,S]=[2,8].
    vocab_size, embedding_size, batch, seq = 16, 32, 2, 8
    table = jax.random.uniform(keys[0], (vocab_size, embedding_size),
                               minval=-0.1, maxval=0.1, dtype=jnp.float32)
    x = jax.random.randint(keys[1], (batch, seq), 0, vocab_size, dtype=jnp.int32)

    y = embedding_lookup(table, x)                      # one-hot MXU path
    jax.block_until_ready(y)
    ref = jnp.take(table, x.reshape(-1), axis=0).reshape(batch, seq, embedding_size)
    assert y.shape == (batch, seq, embedding_size)
    assert jnp.allclose(y, ref, atol=1e-6)

    # --- Test 2: multi-tile grid, token padding, k=2 lane packing (D=64) --
    V2, D2, B2, S2 = 300, 64, 4, 300
    table2 = jax.random.uniform(keys[2], (V2, D2), minval=-0.1, maxval=0.1,
                                dtype=jnp.float32)
    x2 = jax.random.randint(keys[3], (B2, S2), 0, V2, dtype=jnp.int32)
    y2 = embedding_lookup(table2, x2)                   # one-hot path, >=2 token tiles
    jax.block_until_ready(y2)
    ref2 = jnp.take(table2, x2.reshape(-1), axis=0).reshape(B2, S2, D2)
    assert y2.shape == (B2, S2, D2)
    assert jnp.allclose(y2, ref2, atol=1e-6)

    # --- Test 3: larger vocab -> DMA row-gather path ----------------------
    V3, D3, B3, S3 = 3000, 32, 2, 40
    table3 = jax.random.uniform(keys[4], (V3, D3), minval=-0.1, maxval=0.1,
                                dtype=jnp.float32)
    x3 = jax.random.randint(keys[5], (B3, S3), 0, V3, dtype=jnp.int32)
    y3 = embedding_lookup(table3, x3)                   # gather path (V3 > 2048)
    jax.block_until_ready(y3)
    ref3 = jnp.take(table3, x3.reshape(-1), axis=0).reshape(B3, S3, D3)
    assert y3.shape == (B3, S3, D3)
    assert jnp.allclose(y3, ref3, atol=1e-6)

    print("KERNEL_OK")
</pallas_src>

<mosaic_0001>
module attributes {stable_mosaic.version = 11 : i64} {
  func.func @_onehot_kernel(%arg0: i32, %arg1: i32, %arg2: memref<8x4xi32, #tpu.memory_space<vmem>>, %arg3: memref<128x32xf32, #tpu.memory_space<vmem>>, %arg4: memref<8x128xf32, #tpu.memory_space<vmem>>, %arg5: memref<8x128xf32, #tpu.memory_space<vmem>>) attributes {dimension_semantics = [#tpu.dimension_semantics<parallel>, #tpu.dimension_semantics<arbitrary>], iteration_bounds = array<i64: 1, 1>, scalar_prefetch = 0 : i64, scratch_operands = 1 : i64, tpu.core_type = #tpu.core_type<tc>, window_params = [{transform_indices = @transform_0, window_bounds = array<i64: 8, 4>}, {transform_indices = @transform_1, window_bounds = array<i64: 128, 32>}, {transform_indices = @transform_2, window_bounds = array<i64: 8, 128>}]} {
    %c0_i32 = arith.constant 0 : i32
    %0 = arith.cmpi eq, %arg1, %c0_i32 : i32
    %1 = arith.extui %0 : i1 to i32
    %c0_i32_0 = arith.constant 0 : i32
    %2 = arith.cmpi ne, %1, %c0_i32_0 : i32
    scf.if %2 {
      %cst_22 = arith.constant 0.000000e+00 : f32
      %48 = vector.broadcast %cst_22 : f32 to vector<8x128xf32>
      %c0_23 = arith.constant 0 : index
      %c0_24 = arith.constant 0 : index
      %49 = vector.load %arg5[%c0_23, %c0_24] : memref<8x128xf32, #tpu.memory_space<vmem>>, vector<8x128xf32>
      tpu.vector_store %arg5[%c0_23, %c0_24], %48 {strides = array<i32>} : memref<8x128xf32, #tpu.memory_space<vmem>>, vector<8x128xf32>,
    } else {
    }
    %c0 = arith.constant 0 : index
    %c0_1 = arith.constant 0 : index
    %3 = vector.load %arg2[%c0, %c0_1] : memref<8x4xi32, #tpu.memory_space<vmem>>, vector<8x4xi32>
    %c0_2 = arith.constant 0 : index
    %c0_3 = arith.constant 0 : index
    %4 = vector.load %arg3[%c0_2, %c0_3] : memref<128x32xf32, #tpu.memory_space<vmem>>, vector<128x32xf32>
    %c128_i32 = arith.constant 128 : i32
    %5 = arith.muli %arg1, %c128_i32 : i32
    %6 = tpu.iota {dimensions = array<i32: 1>} : vector<8x128xi32>
    %7 = vector.broadcast %5 : i32 to vector<8x128xi32>
    %8 = arith.addi %7, %6 : vector<8x128xi32>
    %9 = vector.extract_strided_slice %3 {offsets = [0, 0], sizes = [8, 1], strides = [1, 1]} : vector<8x4xi32> to vector<8x1xi32>
    %10 = vector.broadcast %9 : vector<8x1xi32> to vector<8x128xi32>
    %11 = arith.cmpi eq, %8, %10 : vector<8x128xi32>
    %12 = arith.extui %11 : vector<8x128xi1> to vector<8x128xi32>
    %13 = arith.sitofp %12 : vector<8x128xi32> to vector<8x128xf32>
    %c0_4 = arith.constant 0 : index
    %c0_5 = arith.constant 0 : index
    %14 = vector.load %arg5[%c0_4, %c0_5] : memref<8x128xf32, #tpu.memory_space<vmem>>, vector<8x32xf32>
    %cst = arith.constant dense<0.000000e+00> : vector<8x32xf32>
    %15 = tpu.matmul %13, %4, %cst {dimension_numbers = #tpu.dot_dimension_numbers<[1], [0], [0], [1], [0, 0, 1, 1], [], []>} : vector<8x128xf32>, vector<128x32xf32>, vector<8x32xf32> -> vector<8x32xf32>
    %16 = arith.addf %14, %15 : vector<8x32xf32>
    %c0_6 = arith.constant 0 : index
    %c0_7 = arith.constant 0 : index
    %17 = vector.load %arg5[%c0_6, %c0_7] : memref<8x128xf32, #tpu.memory_space<vmem>>, vector<8x32xf32>
    tpu.vector_store %arg5[%c0_6, %c0_7], %16 {strides = array<i32>} : memref<8x128xf32, #tpu.memory_space<vmem>>, vector<8x32xf32>,
    %18 = vector.extract_strided_slice %3 {offsets = [0, 1], sizes = [8, 1], strides = [1, 1]} : vector<8x4xi32> to vector<8x1xi32>
    %19 = vector.broadcast %18 : vector<8x1xi32> to vector<8x128xi32>
    %20 = arith.cmpi eq, %8, %19 : vector<8x128xi32>
    %21 = arith.extui %20 : vector<8x128xi1> to vector<8x128xi32>
    %22 = arith.sitofp %21 : vector<8x128xi32> to vector<8x128xf32>
    %c0_8 = arith.constant 0 : index
    %c32 = arith.constant 32 : index
    %23 = vector.load %arg5[%c0_8, %c32] : memref<8x128xf32, #tpu.memory_space<vmem>>, vector<8x32xf32>
    %cst_9 = arith.constant dense<0.000000e+00> : vector<8x32xf32>
    %24 = tpu.matmul %22, %4, %cst_9 {dimension_numbers = #tpu.dot_dimension_numbers<[1], [0], [0], [1], [0, 0, 1, 1], [], []>} : vector<8x128xf32>, vector<128x32xf32>, vector<8x32xf32> -> vector<8x32xf32>
    %25 = arith.addf %23, %24 : vector<8x32xf32>
    %c0_10 = arith.constant 0 : index
    %c32_11 = arith.constant 32 : index
    %26 = vector.load %arg5[%c0_10, %c32_11] : memref<8x128xf32, #tpu.memory_space<vmem>>, vector<8x32xf32>
    tpu.vector_store %arg5[%c0_10, %c32_11], %25 {strides = array<i32>} : memref<8x128xf32, #tpu.memory_space<vmem>>, vector<8x32xf32>,
    %27 = vector.extract_strided_slice %3 {offsets = [0, 2], sizes = [8, 1], strides = [1, 1]} : vector<8x4xi32> to vector<8x1xi32>
    %28 = vector.broadcast %27 : vector<8x1xi32> to vector<8x128xi32>
    %29 = arith.cmpi eq, %8, %28 : vector<8x128xi32>
    %30 = arith.extui %29 : vector<8x128xi1> to vector<8x128xi32>
    %31 = arith.sitofp %30 : vector<8x128xi32> to vector<8x128xf32>
    %c0_12 = arith.constant 0 : index
    %c64 = arith.constant 64 : index
    %32 = vector.load %arg5[%c0_12, %c64] : memref<8x128xf32, #tpu.memory_space<vmem>>, vector<8x32xf32>
    %cst_13 = arith.constant dense<0.000000e+00> : vector<8x32xf32>
    %33 = tpu.matmul %31, %4, %cst_13 {dimension_numbers = #tpu.dot_dimension_numbers<[1], [0], [0], [1], [0, 0, 1, 1], [], []>} : vector<8x128xf32>, vector<128x32xf32>, vector<8x32xf32> -> vector<8x32xf32>
    %34 = arith.addf %32, %33 : vector<8x32xf32>
    %c0_14 = arith.constant 0 : index
    %c64_15 = arith.constant 64 : index
    %35 = vector.load %arg5[%c0_14, %c64_15] : memref<8x128xf32, #tpu.memory_space<vmem>>, vector<8x32xf32>
    tpu.vector_store %arg5[%c0_14, %c64_15], %34 {strides = array<i32>} : memref<8x128xf32, #tpu.memory_space<vmem>>, vector<8x32xf32>,
    %36 = vector.extract_strided_slice %3 {offsets = [0, 3], sizes = [8, 1], strides = [1, 1]} : vector<8x4xi32> to vector<8x1xi32>
    %37 = vector.broadcast %36 : vector<8x1xi32> to vector<8x128xi32>
    %38 = arith.cmpi eq, %8, %37 : vector<8x128xi32>
    %39 = arith.extui %38 : vector<8x128xi1> to vector<8x128xi32>
    %40 = arith.sitofp %39 : vector<8x128xi32> to vector<8x128xf32>
    %c0_16 = arith.constant 0 : index
    %c96 = arith.constant 96 : index
    %41 = vector.load %arg5[%c0_16, %c96] : memref<8x128xf32, #tpu.memory_space<vmem>>, vector<8x32xf32>
    %cst_17 = arith.constant dense<0.000000e+00> : vector<8x32xf32>
    %42 = tpu.matmul %40, %4, %cst_17 {dimension_numbers = #tpu.dot_dimension_numbers<[1], [0], [0], [1], [0, 0, 1, 1], [], []>} : vector<8x128xf32>, vector<128x32xf32>, vector<8x32xf32> -> vector<8x32xf32>
    %43 = arith.addf %41, %42 : vector<8x32xf32>
    %c0_18 = arith.constant 0 : index
    %c96_19 = arith.constant 96 : index
    %44 = vector.load %arg5[%c0_18, %c96_19] : memref<8x128xf32, #tpu.memory_space<vmem>>, vector<8x32xf32>
    tpu.vector_store %arg5[%c0_18, %c96_19], %43 {strides = array<i32>} : memref<8x128xf32, #tpu.memory_space<vmem>>, vector<8x32xf32>,
    %c0_i32_20 = arith.constant 0 : i32
    %45 = arith.cmpi eq, %arg1, %c0_i32_20 : i32
    %46 = arith.extui %45 : i1 to i32
    %c0_i32_21 = arith.constant 0 : i32
    %47 = arith.cmpi ne, %46, %c0_i32_21 : i32
    scf.if %47 {
      %c0_22 = arith.constant 0 : index
      %c0_23 = arith.constant 0 : index
      %48 = vector.load %arg5[%c0_22, %c0_23] : memref<8x128xf32, #tpu.memory_space<vmem>>, vector<8x128xf32>
      %c0_24 = arith.constant 0 : index
      %c0_25 = arith.constant 0 : index
      %49 = vector.load %arg4[%c0_24, %c0_25] : memref<8x128xf32, #tpu.memory_space<vmem>>, vector<8x128xf32>
      tpu.vector_store %arg4[%c0_24, %c0_25], %48 {strides = array<i32>} : memref<8x128xf32, #tpu.memory_space<vmem>>, vector<8x128xf32>,
    } else {
    }
    return
  }
  func.func @transform_0(%arg0: i32, %arg1: i32) -> (i32, i32) {
    %c0_i32 = arith.constant 0 : i32
    %c0_i32_0 = arith.constant 0 : i32
    return %arg0, %c0_i32 : i32, i32
  }
  func.func @transform_1(%arg0: i32, %arg1: i32) -> (i32, i32) {
    %c0_i32 = arith.constant 0 : i32
    %c0_i32_0 = arith.constant 0 : i32
    return %arg1, %c0_i32 : i32, i32
  }
  func.func @transform_2(%arg0: i32, %arg1: i32) -> (i32, i32) {
    %c0_i32 = arith.constant 0 : i32
    %c0_i32_0 = arith.constant 0 : i32
    return %arg0, %c0_i32 : i32, i32
  }
}

</mosaic_0001>

<bundles_post_ra>
// kernel: tpu_custom_call.1
= control target key start
LH: loop header
LB: loop body
LE: loop exit
PB: predicated region body
PF: predicated region fallthrough
CT: control target
= control target key end

     0   :  { %v241_v2 = vmov 3   ;;  %v242_v3 = vmov 1   ;;  %s322_s0 = inlined_call_operand.vmem [shape: s32[8,4], index: 0, kind: input, shape index: {}]   ;;  %s323_s1 = inlined_call_operand.vmem [shape: f32[128,32], index: 1, kind: input, shape index: {}]   ;;  %s324_s2 = inlined_call_operand.hbm [shape: f32[8,128], index: 2, kind: output, shape index: {}]  }
   0x1   :  { %v17_v0 = vld [vmem:[%s322_s0] sm:$0xff]  ;;  %v33_v1 = vld [vmem:[%s323_s1 + $0x78] sm:$0xff]  ;;  %212 = vset.pattern.permute.xlu1 %v241_v2  ;;  %210 = vset.pattern.permute.xlu0 %v242_v3  ;;  %v32_v4 = vld [vmem:[%s323_s1 + $0x70] sm:$0xff] }
   0x2   :  { %138 = vperm.xlu1 %212, %v17_v0   ;;  %70 = vperm.xlu0 %210, %v17_v0   ;;  %v31_v5 = vld [vmem:[%s323_s1 + $0x68] sm:$0xff] }
   0x3   :  { %144 = vmatpush.msra.mxu3 %v33_v1  ;;  %76 = vmatpush.msra.mxu1 %v33_v1 }
   0x4   :  { %110 = vmatpush.msra.mxu2 %v33_v1  ;;  %46 = vmatpush.msra.mxu0 %v33_v1 }
   0x5   :  { %145 = vmatpush.msra.mxu3 %v32_v4  ;;  %77 = vmatpush.msra.mxu1 %v32_v4 }
   0x6   :  { %7 = vsyncpa [#allocation4], 0  ;;  %v30_v6 = vld [vmem:[%s323_s1 + $0x60] sm:$0xff]  ;;  %111 = vmatpush.msra.mxu2 %v32_v4  ;;  %47 = vmatpush.msra.mxu0 %v32_v4  ;;  %v29_v7 = vld [vmem:[%s323_s1 + $0x58] sm:$0xff]  ;;  %v243_v8 = vmov 2   ;;  %v244_v9 = vmov 0   ;;  %v35_v21 = vlaneseq }
   0x7   :  { %146 = vmatpush.msra.mxu3 %v31_v5  ;;  %78 = vmatpush.msra.mxu1 %v31_v5  ;;  %v28_v10 = vld [vmem:[%s323_s1 + $0x50] sm:$0xff]  ;;  %v27_v11 = vld [vmem:[%s323_s1 + $0x48] sm:$0xff]  ;;  %v26_v12 = vld [vmem:[%s323_s1 + $0x40] sm:$0xff]  ;;  %v245_v25 = vmov 1.0   ;;  %v246_v28 = vmov 0.0   ;;  %s248_s14 = smov 96  }
   0x8   :  { %112 = vmatpush.msra.mxu2 %v31_v5  ;;  %48 = vmatpush.msra.mxu0 %v31_v5  ;;  %v25_v13 = vld [vmem:[%s323_s1 + $0x38] sm:$0xff]  ;;  %v24_v14 = vld [vmem:[%s323_s1 + $0x30] sm:$0xff]  ;;  %v23_v15 = vld [vmem:[%s323_s1 + $0x28] sm:$0xff]  ;;  %v36_v22 = vand.u32 127, %v35_v21  ;;  %16 = vst [vmem:[#allocation2] sm:$0xff] %v246_v28  ;;  %vm67_vm4 = vcmask 261120  }
   0x9   :  { %147 = vmatpush.msra.mxu3 %v30_v6  ;;  %79 = vmatpush.msra.mxu1 %v30_v6  ;;  %v22_v16 = vld [vmem:[%s323_s1 + $0x20] sm:$0xff]  ;;  %v21_v17 = vld [vmem:[%s323_s1 + $0x18] sm:$0xff]  ;;  %v20_v18 = vld [vmem:[%s323_s1 + $0x10] sm:$0xff]  ;;  %s249_s15 = smov 64   ;;  %vm101_vm5 = vcmask 523520   ;;  %vm135_vm6 = vcmask 785920  }
   0xa   :  { %211 = vset.pattern.permute.xlu0 %v243_v8  ;;  %213 = vset.pattern.permute.xlu1 %v244_v9  ;;  %v19_v19 = vld [vmem:[%s323_s1 + $0x8] sm:$0xff]  ;;  %v18_v20 = vld [vmem:[%s323_s1] sm:$0xff]  ;;  %s247_s1 = smov 32   ;;  %vm169_vm7 = vcmask 1048320   ;;  %s250_s16 = smov [#allocation3]  }
   0xb   :  { %104 = vperm.xlu0 %211, %v17_v0   ;;  %40 = vperm.xlu1 %213, %v17_v0   ;;  %s181_s0 = sshll.u32 %s250_s16, 4  ;;  %s183_s19 = sshll.u32 %s324_s2, 4  ;;  %s182_s0 = int_to_ptr.vmem [resolvable:$true] %s181_s0  ;;  %s184_s19 = int_to_ptr.hbm [resolvable:$true] %s183_s19 }
   0xc   :  { %148 = vmatpush.msra.mxu3 %v29_v7  ;;  %80 = vmatpush.msra.mxu1 %v29_v7 }
   0xd   :  { %113 = vmatpush.msra.mxu2 %v30_v6  ;;  %49 = vmatpush.msra.mxu0 %v30_v6 }
   0xe   :  { %149 = vmatpush.msra.mxu3 %v28_v10  ;;  %81 = vmatpush.msra.mxu1 %v28_v10 }
   0xf   :  { %114 = vmatpush.msra.mxu2 %v29_v7  ;;  %50 = vmatpush.msra.mxu0 %v29_v7 }
  0x10   :  { %150 = vmatpush.msra.mxu3 %v27_v11  ;;  %82 = vmatpush.msra.mxu1 %v27_v11 }
  0x11   :  { %115 = vmatpush.msra.mxu2 %v28_v10  ;;  %51 = vmatpush.msra.mxu0 %v28_v10 }
  0x12   :  { %151 = vmatpush.msra.mxu3 %v26_v12  ;;  %83 = vmatpush.msra.mxu1 %v26_v12 }
  0x13   :  { %116 = vmatpush.msra.mxu2 %v27_v11  ;;  %52 = vmatpush.msra.mxu0 %v27_v11 }
  0x14   :  { %152 = vmatpush.msra.mxu3 %v25_v13  ;;  %84 = vmatpush.msra.mxu1 %v25_v13 }
  0x15   :  { %117 = vmatpush.msra.mxu2 %v26_v12  ;;  %53 = vmatpush.msra.mxu0 %v26_v12 }
  0x16   :  { %153 = vmatpush.msra.mxu3 %v24_v14  ;;  %85 = vmatpush.msra.mxu1 %v24_v14 }
  0x17   :  { %118 = vmatpush.msra.mxu2 %v25_v13  ;;  %54 = vmatpush.msra.mxu0 %v25_v13 }
  0x18   :  { %154 = vmatpush.msra.mxu3 %v23_v15  ;;  %86 = vmatpush.msra.mxu1 %v23_v15 }
  0x19   :  { %119 = vmatpush.msra.mxu2 %v24_v14  ;;  %55 = vmatpush.msra.mxu0 %v24_v14 }
  0x1a   :  { %155 = vmatpush.msra.mxu3 %v22_v16  ;;  %87 = vmatpush.msra.mxu1 %v22_v16 }
  0x1b   :  { %120 = vmatpush.msra.mxu2 %v23_v15  ;;  %56 = vmatpush.msra.mxu0 %v23_v15 }
  0x1c   :  { %156 = vmatpush.msra.mxu3 %v21_v17  ;;  %88 = vmatpush.msra.mxu1 %v21_v17 }
  0x1d   :  { %121 = vmatpush.msra.mxu2 %v22_v16  ;;  %57 = vmatpush.msra.mxu0 %v22_v16 }
  0x1e   :  { %157 = vmatpush.msra.mxu3 %v20_v18  ;;  %89 = vmatpush.msra.mxu1 %v20_v18 }
  0x1f   :  { %122 = vmatpush.msra.mxu2 %v21_v17  ;;  %58 = vmatpush.msra.mxu0 %v21_v17 }
  0x20   :  { %158 = vmatpush.msra.mxu3 %v19_v19  ;;  %90 = vmatpush.msra.mxu1 %v19_v19 }
  0x21   :  { %123 = vmatpush.msra.mxu2 %v20_v18  ;;  %59 = vmatpush.msra.mxu0 %v20_v18 }
  0x22   :  { %214 = vset.pattern.permute.xlu0 %v241_v2  ;;  %159 = vmatpush.msra.mxu3 %v18_v20 }
  0x23   :  { %124 = vmatpush.msra.mxu2 %v19_v19  ;;  %60 = vmatpush.msra.mxu0 %v19_v19 }
  0x24   :  { %91 = vmatpush.msra.mxu1 %v18_v20 }
  0x25   :  { %125 = vmatpush.msra.mxu2 %v18_v20  ;;  %61 = vmatpush.msra.mxu0 %v18_v20 }
  0x74   :  { %v139_v23 = vpop.permute.xlu1 %138  ;;  %v71_v24 = vpop.permute.xlu0 %70 }
  0x75   :  { %vm140_vm0 = vcmp.eq.s32.totalorder %v36_v22, %v139_v23  ;;  %vm72_vm1 = vcmp.eq.s32.totalorder %v36_v22, %v71_v24 }
  0x76   :  { %199 = vmatmul.msk.f32.vlgmr.msra.gmra.mxu3 %vm140_vm0, %v245_v25  ;;  %195 = vmatmul.msk.f32.vlgmr.msra.gmra.mxu1 %vm72_vm1, %v245_v25 }
  0x7d   :  { %v105_v26 = vpop.permute.xlu0 %104  ;;  %v41_v27 = vpop.permute.xlu1 %40 }
  0x7e   :  { %vm106_vm2 = vcmp.eq.s32.totalorder %v36_v22, %v105_v26  ;;  %vm42_vm3 = vcmp.eq.s32.totalorder %v36_v22, %v41_v27 }
  0x7f   :  { %197 = vmatmul.msk.f32.vlgmr.msra.gmra.mxu2 %vm106_vm2, %v245_v25  ;;  %193 = vmatmul.msk.f32.vlgmr.msra.gmra.mxu0 %vm42_vm3, %v245_v25 }
  0xf3   :  { %v93_v29 = vpop.f32.mrf.mxu1 }
  0xf4   :  { %97 = vrot.lane.b32.xlu2 %v93_v29, %s247_s1 }
  0xf9   :  { %v161_v30 = vpop.f32.mrf.mxu3 }
  0xfa   :  { %165 = vrot.lane.b32.xlu1 %v161_v30, %s248_s14 }
  0xfc   :  { %v63_v31 = vpop.f32.mrf.mxu0 }
  0xfd   :  { %68 = vst.msk [vmem:[#allocation2] sm:$0xff] %vm67_vm4, %v63_v31 }
 0x102   :  { %v127_v32 = vpop.f32.mrf.mxu2 }
 0x103   :  { %131 = vrot.lane.b32.xlu2 %v127_v32, %s249_s15 }
 0x104   :  { %v75_v33 = vld [vmem:[#allocation2] sm:$0xff] }
 0x14e   :  { %v98_v34 = vpop.permute.xlu2 %97 }
 0x14f   :  { %v100_v35 = vadd.f32 %v98_v34, %v75_v33 }
 0x151   :  { %102 = vst.msk [vmem:[#allocation2] sm:$0xff] %vm101_vm5, %v100_v35 }
 0x158   :  { %v109_v36 = vld [vmem:[#allocation2] sm:$0xff] }
 0x15d   :  { %v132_v37 = vpop.permute.xlu2 %131 }
 0x15e   :  { %v134_v38 = vadd.f32 %v132_v37, %v109_v36 }
 0x160   :  { %136 = vst.msk [vmem:[#allocation2] sm:$0xff] %vm135_vm6, %v134_v38 }
 0x167   :  { %v143_v40 = vld [vmem:[#allocation2] sm:$0xff] }
 0x16c   :  { %v166_v39 = vpop.permute.xlu1 %165 }
 0x16d   :  { %v168_v41 = vadd.f32 %v166_v39, %v143_v40 }
 0x16f   :  { %170 = vst.msk [vmem:[#allocation2] sm:$0xff] %vm169_vm7, %v168_v41 }
 0x176   :  { %v174_v42 = vld [vmem:[#allocation2] sm:$0xff] }
 0x177   :  { %175 = vst [vmem:[#allocation3] sm:$0xff] %v174_v42 }
 0x178   :  { %186 = dma.vmem_to_hbm [thread:$0]  %s182_s0, 128, %s184_s19, [#allocation4]  }
 0x179   :  { %239 = dma.done.wait [#allocation4], 128  }
 0x17a   :  { %240 = vsyncadd [#allocation4], 4294967168 }
 0x17b   :  { %191 = vsyncpa [#allocation4], 1 }

</bundles_post_ra>
